<compile_context>
chip_gen: v6e
topology: v6e:2x2x1
jax: 0.10.0
libtpu: 0.0.40
codegen_flags: <defaults>
</compile_context>

<pallas_src>
import jax
import jax.numpy as jnp
from jax import lax
from jax.experimental import pallas as pl
from jax.experimental.pallas import tpu as pltpu


def conv_bn_silu_kernel(p_ref, w_ref, shift_ref, o_ref):
    """Grid = (Mpad // TM,).  One fused matmul + bias + SiLU per M-tile."""
    # (TM, K) @ (K, C2p) on the MXU, f32 accumulation.
    acc = jnp.dot(p_ref[...], w_ref[...], preferred_element_type=jnp.float32)
    # BN shift (scale already folded into the weights) + SiLU epilogue in f32.
    y = acc + shift_ref[...]
    o_ref[...] = (y * jax.nn.sigmoid(y)).astype(o_ref.dtype)


def _pick_tm(M):
    """Largest power-of-two tile <= 1024 that still leaves >= 2 parallel tiles."""
    for tm in (1024, 512, 256, 128, 64, 32, 16, 8):
        if M >= 2 * tm:
            return tm
    return 8


def conv_forward(x_nchw, w_oihw, gamma, beta, run_mean, run_var,
                 stride=2, padding=1, eps=1e-5):
    N, C1, H, W = x_nchw.shape
    C2, _, KH, KW = w_oihw.shape
    Ho = (H + 2 * padding - KH) // stride + 1
    Wo = (W + 2 * padding - KW) // stride + 1
    M = N * Ho * Wo
    Kc = KH * KW * C1                       # folded contraction dim
    C2p = ((C2 + 127) // 128) * 128         # lane-dense output width

    # ---- glue: layout / im2col (built ONCE as a single contiguous slab) ----
    # TODO(synk): for very large inputs, express the tap offsets via index_map on the
    # padded NHWC tensor instead of materializing the im2col slab in HBM.
    x = jnp.transpose(x_nchw, (0, 2, 3, 1))                       # NHWC
    x = jnp.pad(x, ((0, 0), (padding, padding), (padding, padding), (0, 0)))
    taps = []
    for kh in range(KH):
        for kw in range(KW):
            taps.append(x[:, kh:kh + Ho * stride:stride, kw:kw + Wo * stride:stride, :])
    patches = jnp.concatenate(taps, axis=-1).reshape(M, Kc)       # (M, KH*KW*C1)
    patches = patches.astype(jnp.bfloat16)

    # Weight: OIHW -> (KH, KW, C1, C2) -> (Kc, C2), fold BN scale, pad C2 -> C2p.
    inv_std = 1.0 / jnp.sqrt(run_var + eps)
    scale = (gamma * inv_std).astype(jnp.float32)                 # (C2,)
    shift = (beta - run_mean * gamma * inv_std).astype(jnp.float32)

    w = jnp.transpose(w_oihw, (2, 3, 1, 0)).reshape(Kc, C2).astype(jnp.float32)
    w = w * scale[None, :]                                        # fold BN scale
    w = jnp.pad(w, ((0, 0), (0, C2p - C2))).astype(jnp.bfloat16)  # (Kc, C2p) bf16
    shift_p = jnp.pad(shift, (0, C2p - C2)).reshape(1, C2p)       # (1, C2p) f32

    # Tile M; pad rows with zeros so Mpad % TM == 0 (padded rows produce silu(shift),
    # sliced away below).
    TM = _pick_tm(M)
    Mpad = ((M + TM - 1) // TM) * TM
    if Mpad != M:
        patches = jnp.pad(patches, ((0, Mpad - M), (0, 0)))

    out = pl.pallas_call(
        conv_bn_silu_kernel,
        out_shape=jax.ShapeDtypeStruct((Mpad, C2p), jnp.float32),
        grid_spec=pltpu.PrefetchScalarGridSpec(
            num_scalar_prefetch=0,
            grid=(Mpad // TM,),
            in_specs=[
                pl.BlockSpec((TM, Kc), lambda i: (i, 0)),     # im2col tile (bf16)
                pl.BlockSpec((Kc, C2p), lambda i: (0, 0)),    # folded weight (bf16)
                pl.BlockSpec((1, C2p), lambda i: (0, 0)),     # BN shift (f32)
            ],
            out_specs=pl.BlockSpec((TM, C2p), lambda i: (i, 0)),
        ),
        compiler_params=pltpu.CompilerParams(
            dimension_semantics=("parallel",)),
    )(patches, w, shift_p)

    # (Mpad, C2p) -> (M, C2) -> (N, Ho, Wo, C2) -> NCHW
    out = out[:M, :C2].reshape(N, Ho, Wo, C2)
    return jnp.transpose(out, (0, 3, 1, 2))


def ref_forward(x, w, gamma, beta, mean, var, stride, padding, eps=1e-5):
    y = lax.conv_general_dilated(
        x, w, window_strides=(stride, stride),
        padding=[(padding, padding), (padding, padding)],
        dimension_numbers=("NCHW", "OIHW", "NCHW"))
    inv_std = 1.0 / jnp.sqrt(var + eps)
    s = (gamma * inv_std).reshape(1, -1, 1, 1)
    b = (beta - mean * gamma * inv_std).reshape(1, -1, 1, 1)
    y = y * s + b
    return y * jax.nn.sigmoid(y)


if __name__ == "__main__":
    # Conv(c1=4, c2=8, k=3, s=2, p=1) as used inside ADown.
    N, C1, H, W = 2, 4, 16, 16
    C2, K, S, P = 8, 3, 2, 1

    key = jax.random.PRNGKey(0)
    kx, kw, kg, kb, km, kv = jax.random.split(key, 6)

    x = jax.random.normal(kx, (N, C1, H, W), dtype=jnp.float32)
    w = jax.random.normal(kw, (C2, C1, K, K), dtype=jnp.float32) * 0.1
    gamma = 1.0 + 0.1 * jax.random.normal(kg, (C2,), dtype=jnp.float32)
    beta = 0.1 * jax.random.normal(kb, (C2,), dtype=jnp.float32)
    run_mean = 0.1 * jax.random.normal(km, (C2,), dtype=jnp.float32)
    run_var = jnp.abs(jax.random.normal(kv, (C2,), dtype=jnp.float32)) + 0.5

    out = conv_forward(x, w, gamma, beta, run_mean, run_var, stride=S, padding=P)
    out = jax.block_until_ready(out)

    ref = ref_forward(x, w, gamma, beta, run_mean, run_var, S, P)
    assert out.shape == (N, C2, H // S, W // S), out.shape
    # bf16 inputs on the MXU (f32 accumulation) -> relaxed tolerance vs f32 reference.
    err = float(jnp.max(jnp.abs(out - ref)))
    assert jnp.allclose(out, ref, atol=2e-2, rtol=2e-2), err

    print("KERNEL_OK")
</pallas_src>

<mosaic_0001>
module attributes {stable_mosaic.version = 11 : i64} {
  func.func @conv_bn_silu_kernel(%arg0: i32, %arg1: memref<64x36xbf16, #tpu.memory_space<vmem>>, %arg2: memref<36x128xbf16, #tpu.memory_space<vmem>>, %arg3: memref<1x128xf32, #tpu.memory_space<vmem>>, %arg4: memref<64x128xf32, #tpu.memory_space<vmem>>) attributes {dimension_semantics = [#tpu.dimension_semantics<parallel>], iteration_bounds = array<i64: 2>, scalar_prefetch = 0 : i64, scratch_operands = 0 : i64, tpu.core_type = #tpu.core_type<tc>, window_params = [{transform_indices = @transform_0, window_bounds = array<i64: 64, 36>}, {pipeline_mode = #tpu.pipeline_mode<synchronous>, transform_indices = @transform_1, window_bounds = array<i64: 36, 128>}, {pipeline_mode = #tpu.pipeline_mode<synchronous>, transform_indices = @transform_2, window_bounds = array<i64: 1, 128>}, {transform_indices = @transform_3, window_bounds = array<i64: 64, 128>}]} {
    %c0 = arith.constant 0 : index
    %c0_0 = arith.constant 0 : index
    %0 = vector.load %arg1[%c0, %c0_0] : memref<64x36xbf16, #tpu.memory_space<vmem>>, vector<64x36xbf16>
    %c0_1 = arith.constant 0 : index
    %c0_2 = arith.constant 0 : index
    %1 = vector.load %arg2[%c0_1, %c0_2] : memref<36x128xbf16, #tpu.memory_space<vmem>>, vector<36x128xbf16>
    %cst = arith.constant dense<0.000000e+00> : vector<64x128xf32>
    %2 = tpu.matmul %0, %1, %cst {dimension_numbers = #tpu.dot_dimension_numbers<[1], [0], [0], [1], [0, 0, 1, 1], [], []>} : vector<64x36xbf16>, vector<36x128xbf16>, vector<64x128xf32> -> vector<64x128xf32>
    %c0_3 = arith.constant 0 : index
    %c0_4 = arith.constant 0 : index
    %3 = vector.load %arg3[%c0_3, %c0_4] : memref<1x128xf32, #tpu.memory_space<vmem>>, vector<1x128xf32>
    %4 = vector.broadcast %3 : vector<1x128xf32> to vector<64x128xf32>
    %5 = arith.addf %2, %4 : vector<64x128xf32>
    %6 = arith.negf %5 : vector<64x128xf32>
    %7 = math.exp %6 : vector<64x128xf32>
    %cst_5 = arith.constant 1.000000e+00 : f32
    %8 = vector.broadcast %cst_5 : f32 to vector<64x128xf32>
    %9 = arith.addf %8, %7 : vector<64x128xf32>
    %10 = arith.divf %8, %9 : vector<64x128xf32>
    %11 = arith.mulf %5, %10 : vector<64x128xf32>
    %c0_6 = arith.constant 0 : index
    %c0_7 = arith.constant 0 : index
    %12 = vector.load %arg4[%c0_6, %c0_7] : memref<64x128xf32, #tpu.memory_space<vmem>>, vector<64x128xf32>
    tpu.vector_store %arg4[%c0_6, %c0_7], %11 {strides = array<i32>} : memref<64x128xf32, #tpu.memory_space<vmem>>, vector<64x128xf32>,
    return
  }
  func.func @transform_0(%arg0: i32) -> (i32, i32) {
    %c0_i32 = arith.constant 0 : i32
    %c0_i32_0 = arith.constant 0 : i32
    return %arg0, %c0_i32 : i32, i32
  }
  func.func @transform_1(%arg0: i32) -> (i32, i32) {
    %c0_i32 = arith.constant 0 : i32
    %c0_i32_0 = arith.constant 0 : i32
    %c0_i32_1 = arith.constant 0 : i32
    return %c0_i32, %c0_i32_0 : i32, i32
  }
  func.func @transform_2(%arg0: i32) -> (i32, i32) {
    %c0_i32 = arith.constant 0 : i32
    %c0_i32_0 = arith.constant 0 : i32
    %c0_i32_1 = arith.constant 0 : i32
    return %c0_i32, %c0_i32_0 : i32, i32
  }
  func.func @transform_3(%arg0: i32) -> (i32, i32) {
    %c0_i32 = arith.constant 0 : i32
    %c0_i32_0 = arith.constant 0 : i32
    return %arg0, %c0_i32 : i32, i32
  }
}

</mosaic_0001>

<bundles_post_ra>
// kernel: tpu_custom_call.1
= control target key start
LH: loop header
LB: loop body
LE: loop exit
PB: predicated region body
PF: predicated region fallthrough
CT: control target
= control target key end

     0   :  { %8 = vsyncpa [#allocation3], 0  ;;  %s794_s0 = inlined_call_operand.vmem [shape: bf16[128,36], index: 0, kind: input, shape index: {}]   ;;  %s795_s1 = inlined_call_operand.vmem [shape: bf16[36,128], index: 1, kind: input, shape index: {}]   ;;  %s796_s2 = inlined_call_operand.vmem [shape: f32[1,128], index: 2, kind: input, shape index: {}]   ;;  %s797_s3 = inlined_call_operand.hbm [shape: f32[128,128], index: 3, kind: output, shape index: {}]  }
   0x1   :  { %10 = vsyncpa [#allocation3 + $0x1], 0  ;;  %s677_s12 = smov 0   ;;  %s679_s13 = smov 0  }
   0x2   :  { %s681_s14 = smov 0   ;;  %s683_s15 = smov 0  }
   0x3 LB: > { %s698_s16 = sadd.s32 4294967295, %s652_s15   ;;  %s450_s17 = sadd.s32 4294967294, %s652_s15   ;;  %s652_s15 = sphi %s683_s15, %s803_s15   ;;  %s648_s14 = sphi %s681_s14, %s802_s14   ;;  %s644_s13 = sphi %s679_s13, %s801_s13   ;;  %s640_s12 = sphi %s677_s12, %s800_s12  }
   0x4   : > { %s702_s18 = sadd.s32 1, %s652_s15   ;;  %s91_s19 = sadd.s32 1, %s648_s14 }
   0x5   : > { %s88_s20 = ssub.s32 %s652_s15, %s702_s18  ;;  %p101_p0 = scmp.ne.s32.totalorder %s648_s14, %s644_s13 }
   0x6   : > { %p89_p1 = scmp.eq.s32.totalorder %s88_s20, 0  ;;  %p102_p2 = scmp.eq.s32.totalorder %s698_s16, 1 }
   0x7   : > { %p107_p3 = scmp.ne.s32.totalorder %s644_s13, %s640_s12  ;;  %p108_p4 = scmp.eq.s32.totalorder %s450_s17, 1 }
   0x8   : > { %s713_s21 = scalar_select %p89_p1, %s648_s14, %s91_s19  }
   0x9   : > { %p715_p5 = por %p102_p2, %p101_p0  ;;  %p719_p6 = por %p108_p4, %p107_p3 }
   0xa   : > { %p453_p7 = scmp.ge.s32.totalorder %s652_s15, 1  ;;  %p141_p8 = scmp.lt.s32.totalorder %s652_s15, 3 }
   0xc   : > { %p142_p9 = pnand %p453_p7, %p141_p8 }
   0xd   : > { %s455_s28 = sshll.u32 (!%p142_p9), %s698_s16, 3  ;;  %s162_s10 = sand.u32 (!%p142_p9), 1, %s644_s13  }
   0xe   : > { %145 = sbr.rel (%p142_p9) target bundleno = 282 (0x11a), region = 32  ;;  %p166_p10 = scmp.lt.s32.totalorder (!%p142_p9), %s455_s28, 15 }
   0xf   : > { %s454_s11 = sshll.u32 (!%p142_p9), %s162_s10, 6  ;;  %s482_s19 = sshll.u32 (!%p142_p9), %s698_s16, 10 }
  0x10   : > { %s164_s17 = scalar_lea.vmem (!%p142_p9), [#allocation2], %s454_s11  ;;  %s748_s26 = scalar_lea.hbm (!%p142_p9), %s797_s3, %s482_s19 }
  0x11   : > { %s388_s20 = sshll.u32 (!%p142_p9), %s164_s17, 4  ;;  %s754_s16 = scalar_lea.sflag (!%p142_p9), [#allocation3], %s162_s10  ;;  %s750_s20 = int_to_ptr.vmem [resolvable:$true] %s388_s20 }
  0x12   : > { %s592_s27 = scalar_lea.vmem (!%p142_p9), %s750_s20, 1024 }
  0x13   : > { %v553_v0 = vld [vmem:[%s795_s1 + $0x10] ss:$0 sps:$4 sm:$0x33]   ;;  %vm241_vm0 = vcmask 1041408   ;;  %v554_v1 = vld [vmem:[%s795_s1 + $0x8] sm:$0xff]   ;;  %v555_v3 = vld [vmem:[%s795_s1] sm:$0xff]   ;;  %p593_p11 = scmp.ne.s32.totalorder %s750_s20, %s592_s27 }
  0x14   : > { %510 = vmatprep.subr.msk.bf16.mxu0 %vm241_vm0, %v553_v0  ;;  %511 = vmatprep.subr.msk.bf16.mxu1 %vm241_vm0, %v553_v0  ;;  %v243_v2 = vsel %vm241_vm0, %v553_v0, 0  ;;  %s805_s28 = smov (!%p166_p10, %s455_s28), 15  ;;  %vm228_vm1 = vcmask 293888   ;;  %v457_v8 = vld [vmem:[%s796_s2] ss:$0 sm:$0xff] }
  0x15   : > { %491 = vmatpush3.bf16.msra.mxu0 %v243_v2  ;;  %507 = vmatpush3.bf16.msra.mxu1 %v243_v2  ;;  %s456_s4 = sshll.u32 %s805_s28, 2  ;;  %p594_p12 = pnand %p593_p11, %p715_p5 }
  0x16   : > { %492 = vmatprep.subr.bf16.mxu0 %v554_v1  ;;  %505 = vmatprep.subr.bf16.mxu1 %v554_v1  ;;  %s169_s7 = scalar_lea.vmem %s794_s0, %s456_s4  ;;  %s654_s28 = smov [#allocation2]  }
  0x17   : > { %v556_v4 = vld [vmem:[%s169_s7] sm:$0xff]   ;;  %v557_v5 = vld [vmem:[%s169_s7 + $0x10] sm:$0xff]   ;;  %v558_v6 = vld [vmem:[%s169_s7 + $0x8] sm:$0xff]   ;;  %p595_p13 = pneg %p594_p12  ;;  %s596_s29 = sshll.u32 %s654_s28, 4  ;;  %s597_s29 = int_to_ptr.vmem [resolvable:$false] %s596_s29 }
  0x18   : > { %496 = vmatprep.mubr.msk.bf16.mxu0 %vm228_vm1, %v556_v4  ;;  %500 = vmatprep.mubr.msk.bf16.mxu1 %vm228_vm1, %v557_v5  ;;  %v559_v7 = vld [vmem:[%s169_s7 + $0x18] sm:$0xff]   ;;  %s598_s30 = scalar_lea.vmem %s597_s29, 2048  ;;  %p599_p0 = scmp.lt.s32.totalorder %s750_s20, %s597_s29 }
  0x19   : > { %493 = vmatpush3.bf16.msra.mxu0 %v554_v1  ;;  %508 = vmatpush3.bf16.msra.mxu1 %v554_v1  ;;  %p600_p1 = scmp.lt.s32.totalorder %s598_s30, %s592_s27 }
  0x1a   : > { %494 = vmatprep.subr.bf16.mxu0 %v555_v3  ;;  %506 = vmatprep.subr.bf16.mxu1 %v555_v3 }
  0x1b   : > { %p601_p2 = por %p600_p1, %p599_p0 }
  0x1d   : > { %495 = vmatpush3.bf16.msra.mxu0 %v555_v3  ;;  %509 = vmatpush3.bf16.msra.mxu1 %v555_v3  ;;  %p602_p3 = pnand %p601_p2, %p595_p13 }
  0x20   : > { %497 = vmatmul.mubr.msk.bf16.vlgmr.msra.gmra.mxu0 %vm228_vm1, %v558_v6  ;;  %501 = vmatmul.mubr.msk.bf16.vlgmr.msra.gmra.mxu1 %vm228_vm1, %v559_v7 }
  0xe0   : > { %v498_v9 = vpop.f32.mrf.mxu0  ;;  %v502_v10 = vpop.f32.mrf.mxu1 }
  0xe1   : > { %v288_v11 = vadd.f32 %v498_v9, %v457_v8  ;;  %v304_v12 = vadd.f32 %v502_v10, %v457_v8 }
  0xe2   : > { %v279_v13 = vpop.f32.mrf.mxu0  ;;  %v295_v14 = vpop.f32.mrf.mxu1 }
  0xe3   : > { %v471_v15 = vmul.f32 -1.442695, %v288_v11  ;;  %v475_v16 = vmul.f32 -1.442695, %v304_v12  ;;  %v280_v17 = vadd.f32 %v457_v8, %v279_v13  ;;  %v296_v18 = vadd.f32 %v457_v8, %v295_v14 }
  0xe4   : > { %v499_v19 = vpop.f32.mrf.mxu0  ;;  %v503_v20 = vpop.f32.mrf.mxu1 }
  0xe5   : > { %560 = vpow2.f32 %v471_v15  ;;  %v469_v21 = vmul.f32 -1.442695, %v280_v17  ;;  %v473_v22 = vmul.f32 -1.442695, %v296_v18  ;;  %v291_v23 = vadd.f32 %v499_v19, %v457_v8 }
  0xe6   : > { %562 = vpow2.f32 %v475_v16  ;;  %v307_v24 = vadd.f32 %v503_v20, %v457_v8  ;;  %v282_v25 = vpop.f32.mrf.mxu0  ;;  %v298_v26 = vpop.f32.mrf.mxu1 }
  0xe7   : > { %564 = vpow2.f32 %v469_v21  ;;  %v472_v27 = vmul.f32 -1.442695, %v291_v23  ;;  %v283_v28 = vadd.f32 %v457_v8, %v282_v25  ;;  %v299_v29 = vadd.f32 %v457_v8, %v298_v26 }
  0xe8   : > { %566 = vpow2.f32 %v473_v22  ;;  %v476_v30 = vmul.f32 -1.442695, %v307_v24 }
  0xe9   : > { %568 = vpow2.f32 %v472_v27  ;;  %v470_v31 = vmul.f32 -1.442695, %v283_v28  ;;  %v474_v32 = vmul.f32 -1.442695, %v299_v29 }
  0xea   : > { %570 = vpow2.f32 %v476_v30 }
  0xeb   : > { %572 = vpow2.f32 %v470_v31 }
  0xec   : > { %574 = vpow2.f32 %v474_v32 }
  0xf2   : > { %v561_v33 = vpop.eup %560 }
  0xf3   : > { %v563_v34 = vpop.eup %562  ;;  %v336_v35 = vadd.f32 1.0, %v561_v33 }
  0xf4   : > { %v565_v36 = vpop.eup %564  ;;  %v340_v37 = vadd.f32 1.0, %v563_v34 }
  0xf5   : > { %v567_v38 = vpop.eup %566  ;;  %576 = vrcp.f32 %v336_v35  ;;  %v334_v39 = vadd.f32 1.0, %v565_v36 }
  0xf6   : > { %v569_v40 = vpop.eup %568  ;;  %578 = vrcp.f32 %v340_v37  ;;  %v338_v41 = vadd.f32 1.0, %v567_v38 }
  0xf7   : > { %v571_v42 = vpop.eup %570  ;;  %580 = vrcp.f32 %v334_v39  ;;  %v337_v43 = vadd.f32 1.0, %v569_v40 }
  0xf8   : > { %v573_v44 = vpop.eup %572  ;;  %582 = vrcp.f32 %v338_v41  ;;  %v341_v45 = vadd.f32 1.0, %v571_v42 }
  0xf9   : > { %v575_v46 = vpop.eup %574  ;;  %584 = vrcp.f32 %v337_v43  ;;  %v335_v47 = vadd.f32 1.0, %v573_v44 }
  0xfa   : > { %586 = vrcp.f32 %v341_v45  ;;  %v339_v48 = vadd.f32 1.0, %v575_v46 }
  0xfb   : > { %588 = vrcp.f32 %v335_v47 }
  0xfc   : > { %590 = vrcp.f32 %v339_v48 }
 0x102   : > { %v577_v49 = vpop.eup %576 }
 0x103   : > { %v579_v50 = vpop.eup %578  ;;  %v360_v51 = vmul.f32 %v577_v49, %v288_v11 }
 0x104   : > { %v581_v52 = vpop.eup %580  ;;  %v364_v53 = vmul.f32 %v579_v50, %v304_v12 }
 0x105   : > { %v583_v54 = vpop.eup %582  ;;  %368 = vst [vmem:[%s164_s17 + $0x10] sm:$0xff] %v360_v51  ;;  %v358_v55 = vmul.f32 %v581_v52, %v280_v17 }
 0x106   : > { %v585_v56 = vpop.eup %584  ;;  %372 = vst [vmem:[%s164_s17 + $0x30] sm:$0xff] %v364_v53  ;;  %v362_v57 = vmul.f32 %v583_v54, %v296_v18 }
 0x107   : > { %v587_v58 = vpop.eup %586  ;;  %366 = vst [vmem:[%s164_s17] sm:$0xff] %v358_v55  ;;  %v361_v59 = vmul.f32 %v585_v56, %v291_v23 }
 0x108   : > { %v589_v60 = vpop.eup %588  ;;  %370 = vst [vmem:[%s164_s17 + $0x20] sm:$0xff] %v362_v57  ;;  %v365_v61 = vmul.f32 %v587_v58, %v307_v24 }
 0x109   : > { %v591_v62 = vpop.eup %590  ;;  %369 = vst [vmem:[%s164_s17 + $0x18] sm:$0xff] %v361_v59  ;;  %v359_v63 = vmul.f32 %v589_v60, %v283_v28 }
 0x10a   : > { %373 = vst [vmem:[%s164_s17 + $0x38] sm:$0xff] %v365_v61  ;;  %v363_v0 = vmul.f32 %v591_v62, %v299_v29 }
 0x10b   : > { %367 = vst [vmem:[%s164_s17 + $0x8] sm:$0xff] %v359_v63 }
 0x10c   : > { %371 = vst [vmem:[%s164_s17 + $0x28] sm:$0xff] %v363_v0 }
 0x10d   : > { %605 = shalt.err (!%p602_p3)
}
 0x10e   : > { %s606_s4 = scalar_lea.hbm %s748_s26, 1024  ;;  %s610_s7 = scalar_lea.hbm %s797_s3, 2048 }
 0x10f   : > { %p607_p4 = scmp.ne.s32.totalorder %s748_s26, %s606_s4  ;;  %p611_p9 = scmp.lt.s32.totalorder %s748_s26, %s797_s3 }
 0x110   : > { %p612_p10 = scmp.lt.s32.totalorder %s610_s7, %s606_s4 }
 0x111   : > { %p608_p7 = pnand %p607_p4, %p715_p5 }
 0x112   : > { %p613_p11 = por %p612_p10, %p611_p9 }
 0x113   : > { %p609_p8 = pneg %p608_p7 }
 0x115   : > { %p614_p12 = pnand %p613_p11, %p609_p8 }
 0x117   : > { %617 = shalt.err (!%p614_p12)
}
 0x118   : > { %s655_s10 = smov 128   ;;  %s656_s11 = smov 8  }
 0x119   : > { %512 = dma.vmem_to_hbm [thread:$0]  (%p715_p5), %s750_s20, 1024, %s748_s26, %s754_s16, %s655_s10, %s655_s10, %s656_s11  }
 0x11a PF: > { %p518_p13 = scmp.ge.s32.totalorder %s652_s15, 2  ;;  %s403_s17 = sand.u32 1, %s640_s12  }
 0x11b   : > { %s404_s19 = scalar_lea.sflag [#allocation3], %s403_s17 }
 0x11c   : > { %p515_p0 = pnand %p518_p13, %p719_p6 }
 0x11e   : > { %p516_p1 = pneg %p515_p0 }
 0x120   : > { %635 = dma.done.wait (%p516_p1), %s404_s19, 1024  }
 0x121   : > { %637 = vsyncadd (%p516_p1), %s404_s19, 4294966272  ;;  %p13_p2 = scmp.ge.s32.totalorder %s702_s18, 4   ;;  %s800_s12 = smov %s644_s13 }
 0x122   : > { %s801_s13 = smov %s648_s14  ;;  %s802_s14 = smov %s713_s21 }
 0x123   : > { %s803_s15 = smov %s702_s18  ;;  %15 = sbr.rel (!%p13_p2) target bundleno = 3 (0x3), region = 67 }
 0x128   :  { %409 = vsyncpa [#allocation3], 1 }
 0x129   :  { %411 = vsyncpa [#allocation3 + $0x1], 1 }

</bundles_post_ra>
